<compile_context>
chip_gen: v7x
topology: tpu7x:2x2x1
jax: 0.10.0
libtpu: 0.0.40
codegen_flags: <defaults>
</compile_context>

<pallas_src>
import functools

import jax
import jax.numpy as jnp
from jax.experimental import pallas as pl
from jax.experimental.pallas import tpu as pltpu

LANE = 128
SUBLANE = 8


def _round_up(a, b):
    return (a + b - 1) // b * b


def _imgsmlp_kernel(x_ref, w_ref, shift_ref, o_ref, *, nb, cin, cout, nl, slope):
    """Fused 1x1 conv (channel contraction) + folded-BN shift + activation.

    x_ref:     (NB*Cin, TP)  pixel tile, pixels on lanes, batch*chan on sublanes
    w_ref:     (Cout, Cin)   conv weight with BN scale already folded in
    shift_ref: (Cout, 1)     BN shift = beta - mean * scale (zeros if no BN)
    o_ref:     (NB*Cout, TP)
    """
    w = w_ref[...]                      # (Cout, Cin) f32
    tp = x_ref.shape[-1]
    # Hoist the shift broadcast out of the unrolled batch loop (JAX does not
    # CSE broadcast_in_dim).
    shift_b = jnp.broadcast_to(shift_ref[...], (cout, tp))
    for n in range(nb):                 # static unroll; nb is small
        x_n = x_ref[pl.ds(n * cin, cin), :]                       # (Cin, TP)
        y = jnp.dot(w, x_n, preferred_element_type=jnp.float32)   # (Cout, TP)
        y = y + shift_b
        if nl == 'relu':
            y = jnp.maximum(y, 0.0)
        elif nl == 'leakyrelu':
            # 0 <= slope <= 1 (asserted in wrapper) => leaky_relu == max(y, slope*y)
            y = jnp.maximum(y, slope * y)
        elif nl == 'tanh':
            y = jnp.tanh(y)
        elif nl == 'sigmoid':
            y = jax.nn.sigmoid(y)
        # 'none': pass through
        o_ref[pl.ds(n * cout, cout), :] = y.astype(o_ref.dtype)


def imgsmlp_forward(x_nchw, weight_oi11, bn_gamma=None, bn_beta=None,
                    bn_mean=None, bn_var=None, *, is_bn=True, nl='leakyrelu',
                    slope=None, eps=1e-5):
    """JAX wrapper reproducing ImgSMLP.forward. x_nchw: (N, Cin, H, W)."""
    assert nl in ('none', 'relu', 'leakyrelu', 'tanh', 'sigmoid')
    if nl == 'leakyrelu':
        # Match the PyTorch module's constructor asserts; the max(y, slope*y)
        # trick in the kernel is only valid on this range.
        assert slope is not None and 0.0 <= slope <= 1.0

    N, Cin, H, W = x_nchw.shape
    Cout = weight_oi11.shape[0]
    P = H * W

    # (Cout, Cin, 1, 1) -> (Cout, Cin); fold the BN scale into the weight rows.
    w = weight_oi11.reshape(Cout, Cin).astype(jnp.float32)
    if is_bn:
        scale = bn_gamma / jnp.sqrt(bn_var + eps)
        w = w * scale[:, None]
        shift = bn_beta - bn_mean * scale
    else:
        shift = jnp.zeros((Cout,), jnp.float32)
    shift = shift.reshape(Cout, 1).astype(jnp.float32)

    # Collapse (N, Cin) onto the sublane axis: free, row-major reshape.
    x2d = x_nchw.reshape(N * Cin, P)

    # Batch sub-group per block: smallest divisor of N that keeps both the
    # input (NB*Cin) and output (NB*Cout) row counts sublane-aligned, so the
    # batch can also be split across the grid (v7x megacore) without padding.
    # Fallback: the whole batch in one block (first dim == full array dim).
    NB = N
    for cand in range(1, N + 1):
        if (N % cand == 0 and (cand * Cin) % SUBLANE == 0
                and (cand * Cout) % SUBLANE == 0):
            NB = cand
            break
    GN = N // NB

    # Pixel-tile size from a VMEM budget: double-buffered f32 in+out blocks
    # must stay under ~32 MiB (safe on v5e/v6e/v7x); clamp to the 2048..8192
    # lane sweet spot (>= ~8 KiB per row DMA, multiple of 128) and to the
    # image extent.  Pallas handles a ragged last pixel block.
    VMEM_BUDGET = 32 * 1024 * 1024
    rows_padded = _round_up(NB * Cin, SUBLANE) + _round_up(NB * Cout, SUBLANE)
    tp_budget = max(LANE, (VMEM_BUDGET // (2 * 4 * rows_padded)) // LANE * LANE)
    TP = min(8192, tp_budget)
    TP = max(TP, min(2048, tp_budget))
    TP = min(TP, _round_up(P, LANE))
    GP = pl.cdiv(P, TP)

    kernel = functools.partial(
        _imgsmlp_kernel, nb=NB, cin=Cin, cout=Cout, nl=nl,
        slope=float(slope) if slope is not None else 0.0)

    out2d = pl.pallas_call(
        kernel,
        out_shape=jax.ShapeDtypeStruct((N * Cout, P), x_nchw.dtype),
        grid_spec=pltpu.PrefetchScalarGridSpec(
            num_scalar_prefetch=0,
            grid=(GN, GP),
            in_specs=[
                pl.BlockSpec((NB * Cin, TP), lambda b, p: (b, p)),
                pl.BlockSpec((Cout, Cin), lambda b, p: (0, 0)),
                pl.BlockSpec((Cout, 1), lambda b, p: (0, 0)),
            ],
            out_specs=pl.BlockSpec((NB * Cout, TP), lambda b, p: (b, p)),
        ),
        compiler_params=pltpu.CompilerParams(
            dimension_semantics=("parallel", "parallel"),
            vmem_limit_bytes=48 * 1024 * 1024),
    )(x2d, w, shift)

    # (N*Cout, H*W) -> NCHW: free reshape, no transpose.
    return out2d.reshape(N, Cout, H, W)


def _reference(x_nchw, weight_oi11, bn_gamma, bn_beta, bn_mean, bn_var,
               *, is_bn, nl, slope, eps=1e-5):
    """Pure-JAX reference (lax conv) for a correctness check."""
    y = jax.lax.conv_general_dilated(
        x_nchw, weight_oi11, window_strides=(1, 1), padding='VALID',
        dimension_numbers=('NCHW', 'OIHW', 'NCHW'))
    if is_bn:
        scale = bn_gamma / jnp.sqrt(bn_var + eps)
        shift = bn_beta - bn_mean * scale
        y = y * scale[None, :, None, None] + shift[None, :, None, None]
    if nl == 'relu':
        y = jnp.maximum(y, 0.0)
    elif nl == 'leakyrelu':
        y = jnp.where(y >= 0, y, slope * y)
    elif nl == 'tanh':
        y = jnp.tanh(y)
    elif nl == 'sigmoid':
        y = jax.nn.sigmoid(y)
    return y


if __name__ == "__main__":
    # ImgSMLP(ic=4, oc=8, is_bn=True, nl='leakyrelu', slope=0.1)
    N, Cin, H, W = 2, 4, 16, 16
    Cout = 8
    nl, slope, is_bn = 'leakyrelu', 0.1, True

    key = jax.random.PRNGKey(0)
    kx, kw, kg, kb, km, kv = jax.random.split(key, 6)

    x = jax.random.normal(kx, (N, Cin, H, W), jnp.float32)
    weight = jax.random.normal(kw, (Cout, Cin, 1, 1), jnp.float32) * 0.1
    gamma = 1.0 + 0.1 * jax.random.normal(kg, (Cout,), jnp.float32)
    beta = 0.1 * jax.random.normal(kb, (Cout,), jnp.float32)
    running_mean = 0.1 * jax.random.normal(km, (Cout,), jnp.float32)
    running_var = jnp.abs(1.0 + 0.1 * jax.random.normal(kv, (Cout,), jnp.float32))

    out = imgsmlp_forward(x, weight, gamma, beta, running_mean, running_var,
                          is_bn=is_bn, nl=nl, slope=slope)
    out = jax.block_until_ready(out)

    ref = _reference(x, weight, gamma, beta, running_mean, running_var,
                     is_bn=is_bn, nl=nl, slope=slope)
    assert out.shape == (N, Cout, H, W)
    assert jnp.allclose(out, ref, atol=1e-4, rtol=1e-4)

    print("KERNEL_OK")
</pallas_src>

<mosaic_0001>
module attributes {stable_mosaic.version = 11 : i64} {
  func.func @_imgsmlp_kernel(%arg0: i32, %arg1: i32, %arg2: memref<8x256xf32, #tpu.memory_space<vmem>>, %arg3: memref<8x4xf32, #tpu.memory_space<vmem>>, %arg4: memref<8x1xf32, #tpu.memory_space<vmem>>, %arg5: memref<16x256xf32, #tpu.memory_space<vmem>>) attributes {dimension_semantics = [#tpu.dimension_semantics<parallel>, #tpu.dimension_semantics<parallel>], iteration_bounds = array<i64: 1, 1>, scalar_prefetch = 0 : i64, scratch_operands = 0 : i64, tpu.core_type = #tpu.core_type<tc>, window_params = [{transform_indices = @transform_0, window_bounds = array<i64: 8, 256>}, {pipeline_mode = #tpu.pipeline_mode<synchronous>, transform_indices = @transform_1, window_bounds = array<i64: 8, 4>}, {pipeline_mode = #tpu.pipeline_mode<synchronous>, transform_indices = @transform_2, window_bounds = array<i64: 8, 1>}, {transform_indices = @transform_3, window_bounds = array<i64: 16, 256>}]} {
    %c0 = arith.constant 0 : index
    %c0_0 = arith.constant 0 : index
    %0 = vector.load %arg3[%c0, %c0_0] : memref<8x4xf32, #tpu.memory_space<vmem>>, vector<8x4xf32>
    %c0_1 = arith.constant 0 : index
    %c0_2 = arith.constant 0 : index
    %1 = vector.load %arg4[%c0_1, %c0_2] : memref<8x1xf32, #tpu.memory_space<vmem>>, vector<8x1xf32>
    %2 = vector.shape_cast %1 : vector<8x1xf32> to vector<8x1xf32>
    %3 = vector.broadcast %2 : vector<8x1xf32> to vector<8x256xf32>
    %c0_3 = arith.constant 0 : index
    %c0_4 = arith.constant 0 : index
    %4 = vector.load %arg2[%c0_3, %c0_4] : memref<8x256xf32, #tpu.memory_space<vmem>>, vector<4x256xf32>
    %cst = arith.constant dense<0.000000e+00> : vector<8x256xf32>
    %5 = tpu.matmul %0, %4, %cst {dimension_numbers = #tpu.dot_dimension_numbers<[1], [0], [0], [1], [0, 0, 1, 1], [], []>} : vector<8x4xf32>, vector<4x256xf32>, vector<8x256xf32> -> vector<8x256xf32>
    %6 = arith.addf %5, %3 : vector<8x256xf32>
    %cst_5 = arith.constant 1.000000e-01 : f32
    %7 = vector.broadcast %cst_5 : f32 to vector<8x256xf32>
    %8 = arith.mulf %7, %6 : vector<8x256xf32>
    %9 = arith.maximumf %6, %8 : vector<8x256xf32>
    %c0_6 = arith.constant 0 : index
    %c0_7 = arith.constant 0 : index
    %10 = vector.load %arg5[%c0_6, %c0_7] : memref<16x256xf32, #tpu.memory_space<vmem>>, vector<8x256xf32>
    tpu.vector_store %arg5[%c0_6, %c0_7], %9 {strides = array<i32>} : memref<16x256xf32, #tpu.memory_space<vmem>>, vector<8x256xf32>,
    %c4 = arith.constant 4 : index
    %c0_8 = arith.constant 0 : index
    %11 = vector.load %arg2[%c4, %c0_8] : memref<8x256xf32, #tpu.memory_space<vmem>>, vector<4x256xf32>
    %cst_9 = arith.constant dense<0.000000e+00> : vector<8x256xf32>
    %12 = tpu.matmul %0, %11, %cst_9 {dimension_numbers = #tpu.dot_dimension_numbers<[1], [0], [0], [1], [0, 0, 1, 1], [], []>} : vector<8x4xf32>, vector<4x256xf32>, vector<8x256xf32> -> vector<8x256xf32>
    %13 = arith.addf %12, %3 : vector<8x256xf32>
    %cst_10 = arith.constant 1.000000e-01 : f32
    %14 = vector.broadcast %cst_10 : f32 to vector<8x256xf32>
    %15 = arith.mulf %14, %13 : vector<8x256xf32>
    %16 = arith.maximumf %13, %15 : vector<8x256xf32>
    %c8 = arith.constant 8 : index
    %c0_11 = arith.constant 0 : index
    %17 = vector.load %arg5[%c8, %c0_11] : memref<16x256xf32, #tpu.memory_space<vmem>>, vector<8x256xf32>
    tpu.vector_store %arg5[%c8, %c0_11], %16 {strides = array<i32>} : memref<16x256xf32, #tpu.memory_space<vmem>>, vector<8x256xf32>,
    return
  }
  func.func @transform_0(%arg0: i32, %arg1: i32) -> (i32, i32) {
    %c0_i32 = arith.constant 0 : i32
    return %arg0, %arg1 : i32, i32
  }
  func.func @transform_1(%arg0: i32, %arg1: i32) -> (i32, i32) {
    %c0_i32 = arith.constant 0 : i32
    %c0_i32_0 = arith.constant 0 : i32
    %c0_i32_1 = arith.constant 0 : i32
    return %c0_i32, %c0_i32_0 : i32, i32
  }
  func.func @transform_2(%arg0: i32, %arg1: i32) -> (i32, i32) {
    %c0_i32 = arith.constant 0 : i32
    %c0_i32_0 = arith.constant 0 : i32
    %c0_i32_1 = arith.constant 0 : i32
    return %c0_i32, %c0_i32_0 : i32, i32
  }
  func.func @transform_3(%arg0: i32, %arg1: i32) -> (i32, i32) {
    %c0_i32 = arith.constant 0 : i32
    return %arg0, %arg1 : i32, i32
  }
}

</mosaic_0001>

<bundles_post_ra>
// kernel: tpu_custom_call.1
= control target key start
LH: loop header
LB: loop body
LE: loop exit
PB: predicated region body
PF: predicated region fallthrough
CT: control target
= control target key end

     0   :  { %vm28_vm0 = vcmask 1043456   ;;  %v251_v2 = vmov 0.0   ;;  %vm24_vm1 = vcmask 31744   ;;  %s310_s0 = inlined_call_operand.vmem [shape: f32[8,256], index: 0, kind: input, shape index: {}]   ;;  %s311_s1 = inlined_call_operand.vmem [shape: f32[8,4], index: 1, kind: input, shape index: {}]   ;;  %s312_s2 = inlined_call_operand.vmem [shape: f32[8,1], index: 2, kind: input, shape index: {}]   ;;  %s313_s3 = inlined_call_operand.hbm [shape: f32[16,256], index: 3, kind: output, shape index: {}]  }
   0x1   :  { %v23_v0 = vld [vmem:[%s310_s0 + $0x8] sm:$0xf]  ;;  %v22_v1 = vld [vmem:[%s310_s0] sm:$0xf]  ;;  %99 = vmatprep.mubr.f32.mxu0 %v251_v2  ;;  %v113_v4 = vld [vmem:[%s310_s0 + $0x8] sm:$0xf0]  ;;  %186 = vmatprep.mubr.f32.mxu1 %v251_v2 }
   0x2   :  { %215 = vmatprep.subr.msk.mxu0 %vm28_vm0, %v23_v0  ;;  %v15_v3 = vld [vmem:[%s311_s1] sm:$0xff]  ;;  %v117_v6 = vrot.slane %v113_v4, 4 }
   0x3   :  { %v112_v5 = vld [vmem:[%s310_s0] sm:$0xf0]  ;;  %216 = vmatpush1.msk.msra.mxu0 %vm28_vm0, %v22_v1 }
   0x4   :  { %v116_v7 = vrot.slane %v112_v5, 4  ;;  %v16_v8 = vld [vmem:[%s312_s2] sm:$0xff] }
   0x5   :  { %8 = vsyncpa [#allocation3], 0  ;;  %217 = vmatmul.mubr.msk.f32.vlgmr.msra.gmra.mrb[0].mxu0 %vm24_vm1, %v15_v3  ;;  %v252_v9 = vmov 0   ;;  %218 = vmatprep.subr.msk.mxu1 %vm28_vm0, %v117_v6  ;;  %s253_s0 = smov [#allocation2]  }
   0x6   :  { %226 = vset.pattern.permute.xlu0 %v252_v9  ;;  %219 = vmatpush1.msk.msra.mxu1 %vm28_vm0, %v116_v7  ;;  %s204_s1 = sshll.u32 %s253_s0, 4  ;;  %s205_s1 = int_to_ptr.vmem [resolvable:$true] %s204_s1 }
   0x7   :  { %19 = vperm.xlu0 %226, %v16_v8   ;;  %220 = vmatmul.mubr.msk.f32.vlgmr.msra.gmra.mrb[0].mxu1 %vm24_vm1, %v15_v3  ;;  %s227_s2 = scalar_lea.vmem %s205_s1, 512  ;;  %p232_p1 = scmp.lt.s32.totalorder %s205_s1, %s205_s1 }
   0x8   :  { %p228_p0 = scmp.ne.s32.totalorder %s205_s1, %s227_s2  ;;  %p233_p2 = scmp.lt.s32.totalorder %s227_s2, %s227_s2 }
   0xa   :  { %p234_p3 = por %p233_p2, %p232_p1 }
   0xc   :  { %p235_p4 = pnand %p234_p3, %p228_p0 }
  0x86   :  { %v20_v10 = vpop.permute.xlu0 %19 }
  0xd8   :  { %v101_v11 = vpop.f32.mrb[0].mxu0 }
  0xd9   :  { %v102_v12 = vadd.f32 %v101_v11, %v20_v10  ;;  %v103_v13 = vpop.f32.mrb[1].mxu0 }
  0xda   :  { %v104_v14 = vadd.f32 %v103_v13, %v20_v10  ;;  %v188_v16 = vpop.f32.mrb[0].mxu1 }
  0xdb   :  { %v106_v15 = vmul.f32 0.1, %v102_v12  ;;  %v189_v18 = vadd.f32 %v188_v16, %v20_v10  ;;  %v190_v19 = vpop.f32.mrb[1].mxu1 }
  0xdc   :  { %v107_v17 = vmul.f32 0.1, %v104_v14  ;;  %v191_v21 = vadd.f32 %v190_v19, %v20_v10 }
  0xdd   :  { %v108_v20 = vmax.f32 %v102_v12, %v106_v15  ;;  %v193_v23 = vmul.f32 0.1, %v189_v18 }
  0xde   :  { %v109_v22 = vmax.f32 %v104_v14, %v107_v17  ;;  %v194_v24 = vmul.f32 0.1, %v191_v21 }
  0xdf   :  { %110 = vst [vmem:[#allocation2] sm:$0xff] %v108_v20  ;;  %v195_v25 = vmax.f32 %v189_v18, %v193_v23 }
  0xe0   :  { %111 = vst [vmem:[#allocation2 + $0x8] sm:$0xff] %v109_v22  ;;  %v196_v26 = vmax.f32 %v191_v21, %v194_v24 }
  0xe1   :  { %197 = vst [vmem:[#allocation2 + $0x10] sm:$0xff] %v195_v25 }
  0xe2   :  { %198 = vst [vmem:[#allocation2 + $0x18] sm:$0xff] %v196_v26 }
  0xe3   :  { %238 = shalt.err (!%p235_p4)
}
  0xe4   :  { %s239_s26 = scalar_lea.hbm %s313_s3, 512 }
  0xe5   :  { %p240_p5 = scmp.ne.s32.totalorder %s313_s3, %s239_s26  ;;  %p243_p6 = scmp.lt.u32.totalorder %s239_s26, %s313_s3 }
  0xe7   :  { %p245_p7 = pnand %p243_p6, %p240_p5 }
  0xe9   :  { %248 = shalt.err (!%p245_p7)
}
  0xea   :  { %s254_s4 = smov 256   ;;  %s255_s5 = smov 16  }
  0xeb   :  { %210 = dma.vmem_to_hbm [thread:$0]  %s205_s1, 512, %s313_s3, [#allocation3], %s254_s4, %s254_s4, %s255_s5  }
  0xec   :  { %249 = dma.done.wait [#allocation3], 512  }
  0xed   :  { %250 = vsyncadd [#allocation3], 4294966784 }
  0xee   :  { %214 = vsyncpa [#allocation3], 1 }

</bundles_post_ra>
